<compile_context>
chip_gen: v7x
topology: tpu7x:2x2x1
jax: 0.10.0
libtpu: 0.0.40
codegen_flags: <defaults>
</compile_context>

<pallas_src>
import functools

import jax
import jax.numpy as jnp
from jax import lax
from jax.experimental import pallas as pl
from jax.experimental.pallas import tpu as pltpu

_LANE = 128
_ROW_GRAN = 64  # multiple of the packed sublane count for f32(8)/bf16(16)/int8(32)


def _cdiv(a, b):
    return (a + b - 1) // b


def _round_up(a, b):
    return _cdiv(a, b) * b


def _vmem_budgets():
    """Generation-aware VMEM limits (v5e/v6e: 128 MiB, v7x: 64 MiB per TC)."""
    phys = 64 * 1024 * 1024  # conservative fallback (v7x per-TC VMEM)
    try:
        info = pltpu.get_tpu_info()
        phys = int(getattr(info, "vmem_capacity_bytes", phys))
    except Exception:
        pass
    vmem_limit = min((phys * 3) // 4, 96 * 1024 * 1024)   # 96 MiB v5e/v6e, 48 MiB v7x
    stream_budget = max(vmem_limit // 3, 8 * 1024 * 1024)  # ~32 MiB v5e/v6e, ~16 MiB v7x
    return stream_budget, vmem_limit


def _plan_num_tiles(rows, bytes_per_tile_row_in, bytes_per_tile_row_out,
                    fixed_out_bytes, budget, row_gran=_ROW_GRAN,
                    min_split_bytes=4 * 1024 * 1024):
    """1-D grid sizing: double-buffered in+out blocks per step must fit budget."""
    max_tiles = max(1, _cdiv(rows, row_gran))

    def step_bytes(nt):
        t = _round_up(_cdiv(rows, nt), row_gran)
        return 2 * (t * (bytes_per_tile_row_in + bytes_per_tile_row_out)
                    + fixed_out_bytes)

    nt = 1
    while step_bytes(nt) > budget and nt < max_tiles:
        nt *= 2
    nt = min(nt, max_tiles)
    # v7x megacore: a "parallel" grid only shards across the 2 TensorCores with
    # >=2 steps; force a split for any stream worth splitting.
    if nt == 1 and max_tiles >= 2 and rows * bytes_per_tile_row_in > min_split_bytes:
        nt = 2
    tile = _round_up(_cdiv(rows, nt), row_gran)
    return nt, tile


def _sse_partial_kernel(x_ref, recon_ref, sse_ref, *, row_chunk):
    """Per-tile partial sum of (x - recon)^2, folded to a (8, fold) block."""
    tile_x, hw = x_ref.shape
    sub, fold = sse_ref.shape
    n_iter = tile_x // row_chunk

    def body(i, acc):
        r0 = pl.multiple_of(i * row_chunk, row_chunk)
        d = (x_ref[pl.ds(r0, row_chunk), :].astype(jnp.float32)
             - recon_ref[pl.ds(r0, row_chunk), :].astype(jnp.float32))
        sq = d * d
        # Fold rows (sublane groups) and lane-tiles into a single vreg-sized acc.
        for g in range(row_chunk // sub):
            for j in range(hw // fold):
                acc = acc + sq[g * sub:(g + 1) * sub, j * fold:(j + 1) * fold]
        return acc

    sse_ref[...] = lax.fori_loop(0, n_iter, body,
                                 jnp.zeros((sub, fold), jnp.float32))


def _code_abssum_kernel(code_ref, abs_ref, *, row_chunk):
    """Per-row sum of |code| over the spatial axis, lane-folded to `fold` lanes."""
    tile_c, hwc = code_ref.shape
    fold = abs_ref.shape[-1]
    n_iter = tile_c // row_chunk

    @pl.loop(0, n_iter)
    def _(i):
        r0 = pl.multiple_of(i * row_chunk, row_chunk)
        a = jnp.abs(code_ref[pl.ds(r0, row_chunk), :].astype(jnp.float32))
        if fold == 1:
            # Fallback path (spatial size not a multiple of 128): full reduce.
            abs_ref[pl.ds(r0, row_chunk), :] = jnp.sum(a, axis=-1, keepdims=True)
        else:
            acc = a[:, 0:fold]
            for j in range(1, hwc // fold):
                acc = acc + a[:, j * fold:(j + 1) * fold]
            abs_ref[pl.ds(r0, row_chunk), :] = acc


def custom_loss_pallas(x, out, code, *, num_groups, group_size, lam_loss):
    B, C, H, W = x.shape
    assert out.shape == x.shape, "x and out must have identical shapes"
    Bc, Cc, Hc, Wc = code.shape
    assert Cc == num_groups * group_size, "code channels must be num_groups*group_size"
    assert Bc == B, "code batch must match x batch"

    hw = H * W
    hwc = Hc * Wc
    rows_x = B * C
    rows_c = Bc * Cc

    # Lane-dense 2-D slabs (row-major NCHW -> (rows, spatial) is a free reshape).
    x2 = x.reshape(rows_x, hw)
    out2 = out.reshape(rows_x, hw)
    code2 = code.reshape(rows_c, hwc)

    stream_budget, vmem_limit = _vmem_budgets()
    compiler_params = pltpu.CompilerParams(
        dimension_semantics=("parallel",),   # disjoint output blocks per step
        vmem_limit_bytes=vmem_limit,
    )

    fold_x = _LANE if hw % _LANE == 0 else hw
    fold_c = _LANE if hwc % _LANE == 0 else 1

    # -------------------- SSE (MSE numerator) over x / out --------------------
    nt_x, tile_x = _plan_num_tiles(
        rows_x,
        bytes_per_tile_row_in=hw * (x.dtype.itemsize + out.dtype.itemsize),
        bytes_per_tile_row_out=0,
        fixed_out_bytes=8 * fold_x * 4,
        budget=stream_budget)
    rows_x_pad = nt_x * tile_x
    if rows_x_pad != rows_x:
        # Zero rows contribute nothing to the SSE (0 - 0)^2.
        x2 = jnp.pad(x2, ((0, rows_x_pad - rows_x), (0, 0)))
        out2 = jnp.pad(out2, ((0, rows_x_pad - rows_x), (0, 0)))

    sse_partial = pl.pallas_call(
        functools.partial(_sse_partial_kernel, row_chunk=_ROW_GRAN),
        out_shape=jax.ShapeDtypeStruct((nt_x * 8, fold_x), jnp.float32),
        grid=(nt_x,),
        in_specs=[
            pl.BlockSpec((tile_x, hw), lambda i: (i, 0)),
            pl.BlockSpec((tile_x, hw), lambda i: (i, 0)),
        ],
        out_specs=pl.BlockSpec((8, fold_x), lambda i: (i, 0)),
        compiler_params=compiler_params,
    )(x2, out2)

    mse = jnp.sum(sse_partial) / jnp.float32(x.size)

    # ------------- per-(batch, channel) sum of |code| over (H, W) -------------
    nt_c, tile_c = _plan_num_tiles(
        rows_c,
        bytes_per_tile_row_in=hwc * code.dtype.itemsize,
        bytes_per_tile_row_out=fold_c * 4,
        fixed_out_bytes=0,
        budget=stream_budget)
    rows_c_pad = nt_c * tile_c
    if rows_c_pad != rows_c:
        # Zero rows -> |0| sums to 0 and are sliced off before the group norm.
        code2 = jnp.pad(code2, ((0, rows_c_pad - rows_c), (0, 0)))

    abs_partial = pl.pallas_call(
        functools.partial(_code_abssum_kernel, row_chunk=_ROW_GRAN),
        out_shape=jax.ShapeDtypeStruct((rows_c_pad, fold_c), jnp.float32),
        grid=(nt_c,),
        in_specs=[pl.BlockSpec((tile_c, hwc), lambda i: (i, 0))],
        out_specs=pl.BlockSpec((tile_c, fold_c), lambda i: (i, 0)),
        compiler_params=compiler_params,
    )(code2)

    # Tiny JAX epilogue: finish the lane fold, then the (B, G, gs) norm tail.
    if fold_c > 1:
        abssum = jnp.sum(abs_partial[:rows_c], axis=1)
    else:
        abssum = abs_partial[:rows_c, 0]
    abssum = abssum.reshape(B, num_groups, group_size)
    group_norm = jnp.sqrt(jnp.sum(abssum * abssum, axis=2))       # (B, num_groups)
    reg = jnp.float32(lam_loss) * jnp.mean(jnp.sum(group_norm, axis=1))

    # TODO(synk): the (B, num_groups, group_size) norm/sum/mean tail stays in
    # JAX; it is a handful of scalars and not worth an in-kernel epilogue.
    return mse + reg


def _reference_loss(x, out, code, *, num_groups, group_size, lam_loss):
    # Pure-JAX reference mirroring the PyTorch forward.
    base = jnp.mean((x - out) ** 2)
    B, C, H, W = code.shape
    c = code.reshape(B, num_groups, group_size, H, W)
    abssum = jnp.sum(jnp.abs(c), axis=(-2, -1))                   # (B, G, gs)
    reg = lam_loss * jnp.mean(jnp.sum(jnp.linalg.norm(abssum, axis=2), axis=1))
    return base + reg


if __name__ == "__main__":
    # Deterministic synthetic config (no checkpoint load).
    lam_loss = 0.1
    num_groups = 2
    group_size = 4

    B, C, H, W = 2, 4, 16, 16
    Cc = num_groups * group_size

    key = jax.random.PRNGKey(0)
    kx, ko, kc = jax.random.split(key, 3)
    x = jax.random.normal(kx, (B, C, H, W), dtype=jnp.float32)
    out = jax.random.normal(ko, (B, C, H, W), dtype=jnp.float32)
    code = jax.random.normal(kc, (B, Cc, H, W), dtype=jnp.float32)

    loss = custom_loss_pallas(
        x, out, code,
        num_groups=num_groups, group_size=group_size, lam_loss=lam_loss,
    )
    loss = jax.block_until_ready(loss)

    ref = _reference_loss(
        x, out, code,
        num_groups=num_groups, group_size=group_size, lam_loss=lam_loss,
    )
    assert jnp.allclose(loss, ref, rtol=1e-5, atol=1e-5), (loss, ref)

    print("KERNEL_OK")
</pallas_src>

<mosaic_0001>
module attributes {stable_mosaic.version = 11 : i64} {
  func.func @_sse_partial_kernel(%arg0: i32, %arg1: memref<64x256xf32, #tpu.memory_space<vmem>>, %arg2: memref<64x256xf32, #tpu.memory_space<vmem>>, %arg3: memref<8x128xf32, #tpu.memory_space<vmem>>) attributes {dimension_semantics = [#tpu.dimension_semantics<parallel>], iteration_bounds = array<i64: 1>, scalar_prefetch = 0 : i64, scratch_operands = 0 : i64, tpu.core_type = #tpu.core_type<tc>, window_params = [{transform_indices = @transform_0, window_bounds = array<i64: 64, 256>}, {transform_indices = @transform_1, window_bounds = array<i64: 64, 256>}, {transform_indices = @transform_2, window_bounds = array<i64: 8, 128>}]} {
    %cst = arith.constant 0.000000e+00 : f32
    %0 = vector.broadcast %cst : f32 to vector<8x128xf32>
    %c0_i32 = arith.constant 0 : i32
    %c64_i32 = arith.constant 64 : i32
    %1 = arith.muli %c0_i32, %c64_i32 : i32
    %2 = tpu.assume_multiple %1, 64 : i32
    %3 = arith.index_cast %2 : i32 to index
    %c0 = arith.constant 0 : index
    %4 = vector.load %arg1[%3, %c0] : memref<64x256xf32, #tpu.memory_space<vmem>>, vector<64x256xf32>
    %5 = arith.index_cast %2 : i32 to index
    %c0_0 = arith.constant 0 : index
    %6 = vector.load %arg2[%5, %c0_0] : memref<64x256xf32, #tpu.memory_space<vmem>>, vector<64x256xf32>
    %7 = arith.subf %4, %6 : vector<64x256xf32>
    %8 = arith.mulf %7, %7 : vector<64x256xf32>
    %9 = vector.extract_strided_slice %8 {offsets = [0, 0], sizes = [8, 128], strides = [1, 1]} : vector<64x256xf32> to vector<8x128xf32>
    %10 = arith.addf %0, %9 : vector<8x128xf32>
    %11 = vector.extract_strided_slice %8 {offsets = [0, 128], sizes = [8, 128], strides = [1, 1]} : vector<64x256xf32> to vector<8x128xf32>
    %12 = arith.addf %10, %11 : vector<8x128xf32>
    %13 = vector.extract_strided_slice %8 {offsets = [8, 0], sizes = [8, 128], strides = [1, 1]} : vector<64x256xf32> to vector<8x128xf32>
    %14 = arith.addf %12, %13 : vector<8x128xf32>
    %15 = vector.extract_strided_slice %8 {offsets = [8, 128], sizes = [8, 128], strides = [1, 1]} : vector<64x256xf32> to vector<8x128xf32>
    %16 = arith.addf %14, %15 : vector<8x128xf32>
    %17 = vector.extract_strided_slice %8 {offsets = [16, 0], sizes = [8, 128], strides = [1, 1]} : vector<64x256xf32> to vector<8x128xf32>
    %18 = arith.addf %16, %17 : vector<8x128xf32>
    %19 = vector.extract_strided_slice %8 {offsets = [16, 128], sizes = [8, 128], strides = [1, 1]} : vector<64x256xf32> to vector<8x128xf32>
    %20 = arith.addf %18, %19 : vector<8x128xf32>
    %21 = vector.extract_strided_slice %8 {offsets = [24, 0], sizes = [8, 128], strides = [1, 1]} : vector<64x256xf32> to vector<8x128xf32>
    %22 = arith.addf %20, %21 : vector<8x128xf32>
    %23 = vector.extract_strided_slice %8 {offsets = [24, 128], sizes = [8, 128], strides = [1, 1]} : vector<64x256xf32> to vector<8x128xf32>
    %24 = arith.addf %22, %23 : vector<8x128xf32>
    %25 = vector.extract_strided_slice %8 {offsets = [32, 0], sizes = [8, 128], strides = [1, 1]} : vector<64x256xf32> to vector<8x128xf32>
    %26 = arith.addf %24, %25 : vector<8x128xf32>
    %27 = vector.extract_strided_slice %8 {offsets = [32, 128], sizes = [8, 128], strides = [1, 1]} : vector<64x256xf32> to vector<8x128xf32>
    %28 = arith.addf %26, %27 : vector<8x128xf32>
    %29 = vector.extract_strided_slice %8 {offsets = [40, 0], sizes = [8, 128], strides = [1, 1]} : vector<64x256xf32> to vector<8x128xf32>
    %30 = arith.addf %28, %29 : vector<8x128xf32>
    %31 = vector.extract_strided_slice %8 {offsets = [40, 128], sizes = [8, 128], strides = [1, 1]} : vector<64x256xf32> to vector<8x128xf32>
    %32 = arith.addf %30, %31 : vector<8x128xf32>
    %33 = vector.extract_strided_slice %8 {offsets = [48, 0], sizes = [8, 128], strides = [1, 1]} : vector<64x256xf32> to vector<8x128xf32>
    %34 = arith.addf %32, %33 : vector<8x128xf32>
    %35 = vector.extract_strided_slice %8 {offsets = [48, 128], sizes = [8, 128], strides = [1, 1]} : vector<64x256xf32> to vector<8x128xf32>
    %36 = arith.addf %34, %35 : vector<8x128xf32>
    %37 = vector.extract_strided_slice %8 {offsets = [56, 0], sizes = [8, 128], strides = [1, 1]} : vector<64x256xf32> to vector<8x128xf32>
    %38 = arith.addf %36, %37 : vector<8x128xf32>
    %39 = vector.extract_strided_slice %8 {offsets = [56, 128], sizes = [8, 128], strides = [1, 1]} : vector<64x256xf32> to vector<8x128xf32>
    %40 = arith.addf %38, %39 : vector<8x128xf32>
    %c1_i32 = arith.constant 1 : i32
    %c0_1 = arith.constant 0 : index
    %c0_2 = arith.constant 0 : index
    %41 = vector.load %arg3[%c0_1, %c0_2] : memref<8x128xf32, #tpu.memory_space<vmem>>, vector<8x128xf32>
    tpu.vector_store %arg3[%c0_1, %c0_2], %40 {strides = array<i32>} : memref<8x128xf32, #tpu.memory_space<vmem>>, vector<8x128xf32>,
    return
  }
  func.func @transform_0(%arg0: i32) -> (i32, i32) {
    %c0_i32 = arith.constant 0 : i32
    %c0_i32_0 = arith.constant 0 : i32
    return %arg0, %c0_i32 : i32, i32
  }
  func.func @transform_1(%arg0: i32) -> (i32, i32) {
    %c0_i32 = arith.constant 0 : i32
    %c0_i32_0 = arith.constant 0 : i32
    return %arg0, %c0_i32 : i32, i32
  }
  func.func @transform_2(%arg0: i32) -> (i32, i32) {
    %c0_i32 = arith.constant 0 : i32
    %c0_i32_0 = arith.constant 0 : i32
    return %arg0, %c0_i32 : i32, i32
  }
}

</mosaic_0001>

<bundles_post_ra>
// kernel: tpu_custom_call.1
= control target key start
LH: loop header
LB: loop body
LE: loop exit
PB: predicated region body
PF: predicated region fallthrough
CT: control target
= control target key end

     0   :  { %7 = vsyncpa [#allocation3], 0  ;;  %s275_s0 = inlined_call_operand.hbm [shape: f32[64,256], index: 0, kind: input, shape index: {}]   ;;  %s276_s1 = inlined_call_operand.hbm [shape: f32[64,256], index: 1, kind: input, shape index: {}]   ;;  %s277_s2 = inlined_call_operand.hbm [shape: f32[8,128], index: 2, kind: output, shape index: {}]  }
   0x1   :  { %8 = vsyncpa [#allocation6], 0 }
   0x2   :  { %9 = vsyncpa [#allocation4], 0  ;;  %s219_s9 = smov [#allocation2]   ;;  %s147_s13 = scalar_lea.hbm %s275_s0, 2048 }
   0x3   :  { %s15_s10 = sshll.u32 %s219_s9, 4  ;;  %p148_p0 = scmp.ne.s32.totalorder %s275_s0, %s147_s13  ;;  %s16_s10 = int_to_ptr.vmem [resolvable:$true] %s15_s10 }
   0x4   :  { %p151_p1 = scmp.lt.u32.totalorder %s147_s13, %s275_s0 }
   0x6   :  { %p153_p2 = pnand %p151_p1, %p148_p0 }
   0x8   :  { %156 = shalt.err (!%p153_p2)
}
   0x9   :  { %s157_s18 = scalar_lea.vmem %s16_s10, 2048  ;;  %p162_p4 = scmp.lt.s32.totalorder %s16_s10, %s16_s10 }
   0xa   :  { %p158_p3 = scmp.ne.s32.totalorder %s16_s10, %s157_s18  ;;  %p163_p5 = scmp.lt.s32.totalorder %s157_s18, %s157_s18 }
   0xc   :  { %p164_p6 = por %p163_p5, %p162_p4 }
   0xe   :  { %p165_p7 = pnand %p164_p6, %p158_p3 }
  0x10   :  { %168 = shalt.err (!%p165_p7)
}
  0x11   :  { %s220_s19 = smov 256   ;;  %s221_s20 = smov 16  }
  0x12   :  { %21 = dma.hbm_to_vmem [thread:$0]  %s275_s0, 2048, %s16_s10, [#allocation3], %s220_s19, %s220_s19, %s221_s20  }
  0x13   :  { %s222_s23 = smov [#allocation5]   ;;  %s169_s27 = scalar_lea.hbm %s276_s1, 2048 }
  0x14   :  { %s27_s24 = sshll.u32 %s222_s23, 4  ;;  %p170_p8 = scmp.ne.s32.totalorder %s276_s1, %s169_s27  ;;  %s28_s24 = int_to_ptr.vmem [resolvable:$true] %s27_s24 }
  0x15   :  { %p173_p9 = scmp.lt.u32.totalorder %s169_s27, %s276_s1 }
  0x17   :  { %p175_p10 = pnand %p173_p9, %p170_p8 }
  0x19   :  { %178 = shalt.err (!%p175_p10)
}
  0x1a   :  { %s179_s4 = scalar_lea.vmem %s28_s24, 2048  ;;  %p184_p12 = scmp.lt.s32.totalorder %s28_s24, %s28_s24 }
  0x1b   :  { %p180_p11 = scmp.ne.s32.totalorder %s28_s24, %s179_s4  ;;  %p185_p13 = scmp.lt.s32.totalorder %s179_s4, %s179_s4 }
  0x1d   :  { %p186_p0 = por %p185_p13, %p184_p12 }
  0x1f   :  { %p187_p1 = pnand %p186_p0, %p180_p11 }
  0x21   :  { %190 = shalt.err (!%p187_p1)
}
  0x22   :  { %33 = dma.hbm_to_vmem [thread:$0]  %s276_s1, 2048, %s28_s24, [#allocation6], %s220_s19, %s220_s19, %s221_s20  }
  0x23   :  { %213 = dma.done.wait [#allocation3], 2048  }
  0x24   :  { %214 = vsyncadd [#allocation3], 4294965248 }
  0x25   :  { %215 = dma.done.wait [#allocation6], 2048  }
  0x26   :  { %216 = vsyncadd [#allocation6], 4294965248  ;;  %v43_v0 = vld [vmem:[#allocation2] sm:$0xff]  ;;  %v44_v1 = vld [vmem:[#allocation2 + $0x8] sm:$0xff]  ;;  %s223_s1 = smov [#allocation7]  }
  0x27   :  { %v45_v2 = vld [vmem:[#allocation2 + $0x10] sm:$0xff]  ;;  %v61_v3 = vld [vmem:[#allocation5] sm:$0xff]  ;;  %v62_v4 = vld [vmem:[#allocation5 + $0x8] sm:$0xff]  ;;  %s132_s6 = sshll.u32 %s223_s1, 4  ;;  %s133_s6 = int_to_ptr.vmem [resolvable:$true] %s132_s6 }
  0x28   :  { %v63_v5 = vld [vmem:[#allocation5 + $0x10] sm:$0xff]  ;;  %v77_v6 = vsub.f32 %v43_v0, %v61_v3  ;;  %v78_v7 = vsub.f32 %v44_v1, %v62_v4  ;;  %v46_v8 = vld [vmem:[#allocation2 + $0x18] sm:$0xff]  ;;  %v47_v11 = vld [vmem:[#allocation2 + $0x20] sm:$0xff]  ;;  %s191_s7 = scalar_lea.vmem %s133_s6, 128  ;;  %p196_p3 = scmp.lt.s32.totalorder %s133_s6, %s133_s6 }
  0x29   :  { %v64_v9 = vld [vmem:[#allocation5 + $0x18] sm:$0xff]  ;;  %v79_v10 = vsub.f32 %v45_v2, %v63_v5  ;;  %v65_v12 = vld [vmem:[#allocation5 + $0x20] sm:$0xff]  ;;  %v48_v16 = vld [vmem:[#allocation2 + $0x28] sm:$0xff]  ;;  %p192_p2 = scmp.ne.s32.totalorder %s133_s6, %s191_s7  ;;  %p197_p4 = scmp.lt.s32.totalorder %s191_s7, %s191_s7 }
  0x2a   :  { %v80_v13 = vsub.f32 %v46_v8, %v64_v9  ;;  %v93_v14 = vmul.f32 %v77_v6, %v77_v6  ;;  %v94_v15 = vmul.f32 %v78_v7, %v78_v7  ;;  %v66_v17 = vld [vmem:[#allocation5 + $0x28] sm:$0xff]  ;;  %v81_v18 = vsub.f32 %v47_v11, %v65_v12  ;;  %v49_v20 = vld [vmem:[#allocation2 + $0x30] sm:$0xff]  ;;  %v50_v25 = vld [vmem:[#allocation2 + $0x38] sm:$0xff] }
  0x2b   :  { %v95_v19 = vmul.f32 %v79_v10, %v79_v10  ;;  %v67_v21 = vld [vmem:[#allocation5 + $0x30] sm:$0xff]  ;;  %v82_v22 = vsub.f32 %v48_v16, %v66_v17  ;;  %v68_v26 = vld [vmem:[#allocation5 + $0x38] sm:$0xff]  ;;  %v51_v30 = vld [vmem:[#allocation2 + $0x40] sm:$0xff]  ;;  %p198_p5 = por %p197_p4, %p196_p3 }
  0x2c   :  { %v96_v23 = vmul.f32 %v80_v13, %v80_v13  ;;  %v110_v24 = vadd.f32 %v94_v15, %v93_v14  ;;  %v83_v27 = vsub.f32 %v49_v20, %v67_v21  ;;  %v97_v28 = vmul.f32 %v81_v18, %v81_v18  ;;  %v69_v31 = vld [vmem:[#allocation5 + $0x40] sm:$0xff]  ;;  %v52_v35 = vld [vmem:[#allocation2 + $0x48] sm:$0xff]  ;;  %v53_v40 = vld [vmem:[#allocation2 + $0x50] sm:$0xff] }
  0x2d   :  { %v84_v32 = vsub.f32 %v50_v25, %v68_v26  ;;  %v98_v33 = vmul.f32 %v82_v22, %v82_v22  ;;  %v70_v36 = vld [vmem:[#allocation5 + $0x48] sm:$0xff]  ;;  %v85_v37 = vsub.f32 %v51_v30, %v69_v31  ;;  %v71_v41 = vld [vmem:[#allocation5 + $0x50] sm:$0xff]  ;;  %v54_v45 = vld [vmem:[#allocation2 + $0x58] sm:$0xff]  ;;  %p199_p6 = pnand %p198_p5, %p192_p2 }
  0x2e   :  { %v111_v29 = vadd.f32 %v110_v24, %v95_v19  ;;  %v99_v38 = vmul.f32 %v83_v27, %v83_v27  ;;  %v86_v42 = vsub.f32 %v52_v35, %v70_v36  ;;  %v72_v46 = vld [vmem:[#allocation5 + $0x58] sm:$0xff]  ;;  %v87_v47 = vsub.f32 %v53_v40, %v71_v41  ;;  %v55_v50 = vld [vmem:[#allocation2 + $0x60] sm:$0xff]  ;;  %v56_v55 = vld [vmem:[#allocation2 + $0x68] sm:$0xff] }
  0x2f   :  { %v100_v43 = vmul.f32 %v84_v32, %v84_v32  ;;  %v101_v48 = vmul.f32 %v85_v37, %v85_v37  ;;  %v73_v51 = vld [vmem:[#allocation5 + $0x60] sm:$0xff]  ;;  %v88_v52 = vsub.f32 %v54_v45, %v72_v46  ;;  %v74_v56 = vld [vmem:[#allocation5 + $0x68] sm:$0xff]  ;;  %v57_v60 = vld [vmem:[#allocation2 + $0x70] sm:$0xff] }
  0x30   :  { %v112_v34 = vadd.f32 %v111_v29, %v96_v23  ;;  %v102_v53 = vmul.f32 %v86_v42, %v86_v42  ;;  %v89_v57 = vsub.f32 %v55_v50, %v73_v51  ;;  %v103_v58 = vmul.f32 %v87_v47, %v87_v47  ;;  %v75_v61 = vld [vmem:[#allocation5 + $0x70] sm:$0xff]  ;;  %v58_v1 = vld [vmem:[#allocation2 + $0x78] sm:$0xff] }
  0x31   :  { %v90_v62 = vsub.f32 %v56_v55, %v74_v56  ;;  %v104_v63 = vmul.f32 %v88_v52, %v88_v52  ;;  %v76_v2 = vld [vmem:[#allocation5 + $0x78] sm:$0xff]  ;;  %v91_v3 = vsub.f32 %v57_v60, %v75_v61 }
  0x32   :  { %v113_v39 = vadd.f32 %v112_v34, %v97_v28  ;;  %v105_v4 = vmul.f32 %v89_v57, %v89_v57  ;;  %v92_v6 = vsub.f32 %v58_v1, %v76_v2 }
  0x33   :  { %v106_v7 = vmul.f32 %v90_v62, %v90_v62  ;;  %v107_v9 = vmul.f32 %v91_v3, %v91_v3 }
  0x34   :  { %v114_v44 = vadd.f32 %v113_v39, %v98_v33  ;;  %v108_v11 = vmul.f32 %v92_v6, %v92_v6 }
  0x36   :  { %v115_v49 = vadd.f32 %v114_v44, %v99_v38 }
  0x38   :  { %v116_v54 = vadd.f32 %v115_v49, %v100_v43 }
  0x3a   :  { %v117_v59 = vadd.f32 %v116_v54, %v101_v48 }
  0x3c   :  { %v118_v0 = vadd.f32 %v117_v59, %v102_v53 }
  0x3e   :  { %v119_v5 = vadd.f32 %v118_v0, %v103_v58 }
  0x40   :  { %v120_v8 = vadd.f32 %v119_v5, %v104_v63 }
  0x42   :  { %v121_v10 = vadd.f32 %v120_v8, %v105_v4 }
  0x44   :  { %v122_v12 = vadd.f32 %v121_v10, %v106_v7 }
  0x46   :  { %v123_v13 = vadd.f32 %v122_v12, %v107_v9 }
  0x48   :  { %v124_v14 = vadd.f32 %v123_v13, %v108_v11 }
  0x4a   :  { %125 = vst [vmem:[#allocation7] sm:$0xff] %v124_v14 }
  0x4b   :  { %202 = shalt.err (!%p199_p6)
}
  0x4c   :  { %s203_s10 = scalar_lea.hbm %s277_s2, 128 }
  0x4d   :  { %p204_p7 = scmp.ne.s32.totalorder %s277_s2, %s203_s10  ;;  %p207_p8 = scmp.lt.u32.totalorder %s203_s10, %s277_s2 }
  0x4f   :  { %p209_p9 = pnand %p207_p8, %p204_p7 }
  0x51   :  { %212 = shalt.err (!%p209_p9)
}
  0x52   :  { %135 = dma.vmem_to_hbm [thread:$0]  %s133_s6, 128, %s277_s2, [#allocation4]  }
  0x53   :  { %217 = dma.done.wait [#allocation4], 128  }
  0x54   :  { %218 = vsyncadd [#allocation4], 4294967168 }
  0x55   :  { %139 = vsyncpa [#allocation3], 1 }
  0x56   :  { %140 = vsyncpa [#allocation6], 1 }
  0x57   :  { %141 = vsyncpa [#allocation4], 1 }

</bundles_post_ra>
